<compile_context>
chip_gen: v7x
topology: tpu7x:2x2x1
jax: 0.10.0
libtpu: 0.0.40
codegen_flags: <defaults>
</compile_context>

<pallas_src>
import math
import functools

import jax
import jax.numpy as jnp
from jax.experimental import pallas as pl
from jax.experimental.pallas import tpu as pltpu


def _round_up(x, m):
    return (x + m - 1) // m * m


def _embed_gather_kernel(ids_ref, table_hbm, out_ref, gather_buf, sem,
                         *, scale, tile, depth):
    # ids_ref    : (T_pad,)   int32   SMEM (scalar-prefetched token ids)
    # table_hbm  : (vocab, d) f32     HBM  (raw ref, no auto-DMA)
    # out_ref    : (tile, d)  f32     VMEM (output block)
    # gather_buf : (tile, d)  f32     VMEM scratch (DMA landing buffer)
    # sem        : (depth,)   DMA semaphores (ring of in-flight row copies)
    t0 = pl.program_id(0) * tile

    def row_copy(r, slot):
        tok = ids_ref[t0 + r]                       # scalar SMEM read
        return pltpu.make_async_copy(
            table_hbm.at[pl.ds(tok, 1), :],         # (1, d) row in HBM
            gather_buf.at[pl.ds(r, 1), :],          # (1, d) row in VMEM
            sem.at[slot])

    # Issue one row-gather DMA per token; keep `depth` copies in flight.
    def issue(r, carry):
        slot = r % depth

        @pl.when(r >= depth)
        def _():
            # Free this semaphore slot: wait for the copy issued `depth`
            # iterations ago (same slot, same transfer size).
            row_copy(r - depth, slot).wait()

        row_copy(r, slot).start()
        return carry

    jax.lax.fori_loop(0, tile, issue, 0)

    # Drain the last `depth` outstanding copies.
    n_drain = min(depth, tile)

    def drain(i, carry):
        r = (tile - n_drain) + i
        row_copy(r, r % depth).wait()
        return carry

    jax.lax.fori_loop(0, n_drain, drain, 0)

    # Fused scale by sqrt(d_model); single pass over the gathered tile.
    out_ref[...] = (gather_buf[...] * scale).astype(out_ref.dtype)


def embeddings_forward(x_ids, lut, d_model, *, tile_tokens=256, dma_depth=8):
    """x_ids: (B, S) int; lut: (vocab, d_model) float -> (B, S, d_model)."""
    B, S = x_ids.shape
    vocab, d = lut.shape
    assert d == d_model

    T = B * S
    # Token tile: large (256) for real workloads, clamped for tiny inputs;
    # multiple of 8 so the output block satisfies the sublane constraint.
    tile = min(int(tile_tokens), _round_up(T, 8))
    tile = _round_up(tile, 8)
    T_pad = _round_up(T, tile)
    depth = min(int(dma_depth), tile)

    # ids -> int32, clamped (out-of-range ids would be an OOB HBM read with a
    # DMA gather), padded with a valid row id (0); pad rows are sliced off.
    ids_flat = jnp.clip(x_ids.reshape(T).astype(jnp.int32), 0, vocab - 1)
    ids_padded = jnp.pad(ids_flat, (0, T_pad - T))

    scale = float(math.sqrt(d_model))

    out_flat = pl.pallas_call(
        functools.partial(_embed_gather_kernel,
                          scale=scale, tile=tile, depth=depth),
        out_shape=jax.ShapeDtypeStruct((T_pad, d_model), lut.dtype),
        grid_spec=pltpu.PrefetchScalarGridSpec(
            num_scalar_prefetch=1,                      # ids -> SMEM
            grid=(T_pad // tile,),
            in_specs=[
                pl.BlockSpec(memory_space=pl.ANY),      # table stays in HBM
            ],
            out_specs=pl.BlockSpec((tile, d_model), lambda i, ids: (i, 0)),
            scratch_shapes=[
                pltpu.VMEM((tile, d_model), lut.dtype), # DMA landing buffer
                pltpu.SemaphoreType.DMA((depth,)),      # in-flight copy ring
            ],
        ),
        compiler_params=pltpu.CompilerParams(
            dimension_semantics=("parallel",),          # megacore-friendly
            vmem_limit_bytes=32 * 1024 * 1024,          # safe on v5e/v6e/v7x
        ),
    )(ids_padded, lut)

    return out_flat[:T].reshape(B, S, d_model)


if __name__ == "__main__":
    d_model = 32
    vocab = 11
    B, S = 2, 8

    key = jax.random.PRNGKey(0)
    k_tab, k_ids = jax.random.split(key)

    # nn.Embedding default init: weight ~ N(0, 1)
    lut = jax.random.normal(k_tab, (vocab, d_model), dtype=jnp.float32)
    x_ids = jax.random.randint(k_ids, (B, S), 0, vocab, dtype=jnp.int32)

    out = embeddings_forward(x_ids, lut, d_model)
    out = jax.block_until_ready(out)

    # reference check (plain JAX)
    ref = lut[x_ids] * math.sqrt(d_model)
    assert out.shape == (B, S, d_model)
    assert jnp.allclose(out, ref, atol=1e-5, rtol=1e-5)

    print("KERNEL_OK")
</pallas_src>

<mosaic_0001>
module attributes {stable_mosaic.version = 11 : i64} {
  func.func @_embed_gather_kernel(%arg0: i32, %arg1: memref<16xi32, #tpu.memory_space<smem>>, %arg2: memref<11x32xf32, #tpu.memory_space<any>>, %arg3: memref<16x32xf32, #tpu.memory_space<vmem>>, %arg4: memref<16x32xf32, #tpu.memory_space<vmem>>, %arg5: memref<8x!tpu.dma_semaphore, #tpu.memory_space<semaphore_mem>>) attributes {dimension_semantics = [#tpu.dimension_semantics<parallel>], iteration_bounds = array<i64: 1>, scalar_prefetch = 1 : i64, scratch_operands = 2 : i64, tpu.core_type = #tpu.core_type<tc>, window_params = [{}, {transform_indices = @transform_1, window_bounds = array<i64: 16, 32>}]} {
    %c16_i32 = arith.constant 16 : i32
    %0 = arith.muli %arg0, %c16_i32 : i32
    %c0_i32 = arith.constant 0 : i32
    %c16_i32_0 = arith.constant 16 : i32
    %1 = arith.addi %c0_i32, %c16_i32_0 : i32
    %c1_i32 = arith.constant 1 : i32
    scf.for %arg6 = %c0_i32 to %1 step %c1_i32  : i32 {
      %c8_i32_8 = arith.constant 8 : i32
      %c0_i32_9 = arith.constant 0 : i32
      %7 = arith.cmpi eq, %c8_i32_8, %c0_i32_9 : i32
      %c1_i32_10 = arith.constant 1 : i32
      %8 = arith.select %7, %c1_i32_10, %c8_i32_8 : i32
      %9 = arith.remsi %arg6, %8 : i32
      %c0_i32_11 = arith.constant 0 : i32
      %10 = arith.cmpi ne, %9, %c0_i32_11 : i32
      %c0_i32_12 = arith.constant 0 : i32
      %11 = arith.cmpi slt, %9, %c0_i32_12 : i32
      %c0_i32_13 = arith.constant 0 : i32
      %12 = arith.cmpi slt, %8, %c0_i32_13 : i32
      %13 = arith.xori %11, %12 : i1
      %14 = arith.andi %13, %10 : i1
      %15 = arith.addi %9, %8 : i32
      %16 = arith.select %14, %15, %9 : i32
      %c8_i32_14 = arith.constant 8 : i32
      %17 = arith.cmpi sge, %arg6, %c8_i32_14 : i32
      %18 = arith.extui %17 : i1 to i32
      %c0_i32_15 = arith.constant 0 : i32
      %19 = arith.cmpi ne, %18, %c0_i32_15 : i32
      scf.if %19 {
        %c8_i32_18 = arith.constant 8 : i32
        %27 = arith.subi %arg6, %c8_i32_18 : i32
        %28 = arith.addi %0, %27 : i32
        %29 = arith.index_cast %28 : i32 to index
        %30 = memref.load %arg1[%29] : memref<16xi32, #tpu.memory_space<smem>>
        %c0_i32_19 = arith.constant 0 : i32
        %31 = tpu.memref_slice %arg2[%30, %c0_i32_19] : memref<11x32xf32, #tpu.memory_space<any>> -> memref<1x32xf32, #tpu.memory_space<any>>
        %c0_i32_20 = arith.constant 0 : i32
        %32 = tpu.memref_slice %arg4[%27, %c0_i32_20] : memref<16x32xf32, #tpu.memory_space<vmem>> -> memref<1x32xf32, #tpu.memory_space<vmem>>
        %33 = tpu.memref_slice %arg5[%16] : memref<8x!tpu.dma_semaphore, #tpu.memory_space<semaphore_mem>> -> memref<1x!tpu.dma_semaphore, #tpu.memory_space<semaphore_mem>>
        %34 = tpu.memref_squeeze %33 : memref<1x!tpu.dma_semaphore, #tpu.memory_space<semaphore_mem>> -> memref<!tpu.dma_semaphore, #tpu.memory_space<semaphore_mem>>
        tpu.wait_dma2 semaphore(%34 : memref<!tpu.dma_semaphore, #tpu.memory_space<semaphore_mem>>) src(%31 : memref<1x32xf32, #tpu.memory_space<any>>) dst(%32 : memref<1x32xf32, #tpu.memory_space<vmem>>)
      } else {
      }
      %20 = arith.addi %0, %arg6 : i32
      %21 = arith.index_cast %20 : i32 to index
      %22 = memref.load %arg1[%21] : memref<16xi32, #tpu.memory_space<smem>>
      %c0_i32_16 = arith.constant 0 : i32
      %23 = tpu.memref_slice %arg2[%22, %c0_i32_16] : memref<11x32xf32, #tpu.memory_space<any>> -> memref<1x32xf32, #tpu.memory_space<any>>
      %c0_i32_17 = arith.constant 0 : i32
      %24 = tpu.memref_slice %arg4[%arg6, %c0_i32_17] : memref<16x32xf32, #tpu.memory_space<vmem>> -> memref<1x32xf32, #tpu.memory_space<vmem>>
      %25 = tpu.memref_slice %arg5[%16] : memref<8x!tpu.dma_semaphore, #tpu.memory_space<semaphore_mem>> -> memref<1x!tpu.dma_semaphore, #tpu.memory_space<semaphore_mem>>
      %26 = tpu.memref_squeeze %25 : memref<1x!tpu.dma_semaphore, #tpu.memory_space<semaphore_mem>> -> memref<!tpu.dma_semaphore, #tpu.memory_space<semaphore_mem>>
      tpu.enqueue_dma source(%23 : memref<1x32xf32, #tpu.memory_space<any>>) target(%24 : memref<1x32xf32, #tpu.memory_space<vmem>>) target_semaphore(%26 : memref<!tpu.dma_semaphore, #tpu.memory_space<semaphore_mem>>)
    }
    %c16_i32_1 = arith.constant 16 : i32
    %c0_i32_2 = arith.constant 0 : i32
    %c8_i32 = arith.constant 8 : i32
    %2 = arith.addi %c0_i32_2, %c8_i32 : i32
    %c1_i32_3 = arith.constant 1 : i32
    scf.for %arg6 = %c0_i32_2 to %2 step %c1_i32_3  : i32 {
      %c8_i32_8 = arith.constant 8 : i32
      %7 = arith.addi %c8_i32_8, %arg6 : i32
      %c8_i32_9 = arith.constant 8 : i32
      %c0_i32_10 = arith.constant 0 : i32
      %8 = arith.cmpi eq, %c8_i32_9, %c0_i32_10 : i32
      %c1_i32_11 = arith.constant 1 : i32
      %9 = arith.select %8, %c1_i32_11, %c8_i32_9 : i32
      %10 = arith.remsi %7, %9 : i32
      %c0_i32_12 = arith.constant 0 : i32
      %11 = arith.cmpi ne, %10, %c0_i32_12 : i32
      %c0_i32_13 = arith.constant 0 : i32
      %12 = arith.cmpi slt, %10, %c0_i32_13 : i32
      %c0_i32_14 = arith.constant 0 : i32
      %13 = arith.cmpi slt, %9, %c0_i32_14 : i32
      %14 = arith.xori %12, %13 : i1
      %15 = arith.andi %14, %11 : i1
      %16 = arith.addi %10, %9 : i32
      %17 = arith.select %15, %16, %10 : i32
      %18 = arith.addi %0, %7 : i32
      %19 = arith.index_cast %18 : i32 to index
      %20 = memref.load %arg1[%19] : memref<16xi32, #tpu.memory_space<smem>>
      %c0_i32_15 = arith.constant 0 : i32
      %21 = tpu.memref_slice %arg2[%20, %c0_i32_15] : memref<11x32xf32, #tpu.memory_space<any>> -> memref<1x32xf32, #tpu.memory_space<any>>
      %c0_i32_16 = arith.constant 0 : i32
      %22 = tpu.memref_slice %arg4[%7, %c0_i32_16] : memref<16x32xf32, #tpu.memory_space<vmem>> -> memref<1x32xf32, #tpu.memory_space<vmem>>
      %23 = tpu.memref_slice %arg5[%17] : memref<8x!tpu.dma_semaphore, #tpu.memory_space<semaphore_mem>> -> memref<1x!tpu.dma_semaphore, #tpu.memory_space<semaphore_mem>>
      %24 = tpu.memref_squeeze %23 : memref<1x!tpu.dma_semaphore, #tpu.memory_space<semaphore_mem>> -> memref<!tpu.dma_semaphore, #tpu.memory_space<semaphore_mem>>
      tpu.wait_dma2 semaphore(%24 : memref<!tpu.dma_semaphore, #tpu.memory_space<semaphore_mem>>) src(%21 : memref<1x32xf32, #tpu.memory_space<any>>) dst(%22 : memref<1x32xf32, #tpu.memory_space<vmem>>)
    }
    %c8_i32_4 = arith.constant 8 : i32
    %c0 = arith.constant 0 : index
    %c0_5 = arith.constant 0 : index
    %3 = vector.load %arg4[%c0, %c0_5] : memref<16x32xf32, #tpu.memory_space<vmem>>, vector<16x32xf32>
    %cst = arith.constant 5.65685415 : f32
    %4 = vector.broadcast %cst : f32 to vector<16x32xf32>
    %5 = arith.mulf %3, %4 : vector<16x32xf32>
    %c0_6 = arith.constant 0 : index
    %c0_7 = arith.constant 0 : index
    %6 = vector.load %arg3[%c0_6, %c0_7] : memref<16x32xf32, #tpu.memory_space<vmem>>, vector<16x32xf32>
    tpu.vector_store %arg3[%c0_6, %c0_7], %5 {strides = array<i32>} : memref<16x32xf32, #tpu.memory_space<vmem>>, vector<16x32xf32>,
    return
  }
  func.func @transform_1(%arg0: i32, %arg1: memref<16xi32, #tpu.memory_space<smem>>) -> (i32, i32) {
    %c0_i32 = arith.constant 0 : i32
    %c0_i32_0 = arith.constant 0 : i32
    return %arg0, %c0_i32 : i32, i32
  }
}

</mosaic_0001>

<bundles_post_ra>
// kernel: tpu_custom_call.1
= control target key start
LH: loop header
LB: loop body
LE: loop exit
PB: predicated region body
PF: predicated region fallthrough
CT: control target
= control target key end

     0   :  { %s371_s0 = inlined_call_operand.hbm [shape: s32[16], index: 0, kind: input, shape index: {}]   ;;  %s372_s1 = inlined_call_operand.hbm [shape: f32[11,32], index: 1, kind: input, shape index: {}]   ;;  %s373_s2 = inlined_call_operand.hbm [shape: f32[16,32], index: 2, kind: output, shape index: {}]  }
   0x1   :  { %s217_s11 = scalar_lea.hbm %s371_s0, 16 }
   0x2   :  { %p218_p0 = scmp.ne.s32.totalorder %s371_s0, %s217_s11  ;;  %p221_p1 = scmp.lt.u32.totalorder %s217_s11, %s371_s0 }
   0x4   :  { %p223_p2 = pnand %p221_p1, %p218_p0 }
   0x6   :  { %226 = shalt.err (!%p223_p2)  }
   0x7   :  { %s299_s16 = smov [#allocation5]  }
   0x8   :  { %8 = dma.hbm_to_smem %s371_s0, 16, %s299_s16, [#allocation4] }
   0x9   :  { %281 = dma.done.wait [#allocation4], 16 }
   0xa   :  { %282 = vsyncadd [#allocation4], 4294967280 }
   0xb   :  { %10 = sfence }
   0xc   :  { %11 = vsyncpa [#allocation7], 0  ;;  %s331_s19 = smov 0  }
   0xd LB: > { %p19_p3 = scmp.lt.s32.totalorder %s293_s19, 0  ;;  %s20_s20 = ssub.s32 0, %s293_s19  ;;  %s293_s19 = sphi %s331_s19, %s18_s19  }
   0xe   : > { %s178_s21 = smin.u32 %s293_s19, %s20_s20  ;;  %p196_p4 = scmp.ge.s32.totalorder %s293_s19, 8 }
   0xf   : > { %s22_s22 = sand.u32 7, %s178_s21  }
  0x10   : > { %s23_s0 = ssub.s32 0, %s22_s22 }
  0x11   : > { %s375_s0 = smov (!%p19_p3, %s23_s0), %s22_s22 }
  0x12   : > { %p180_p5 = scmp.lt.s32.totalorder %s375_s0, 0  ;;  %s29_s23 = sadd.s32 8, %s375_s0 }
  0x14   : > { %s377_s23 = smov (!%p180_p5, %s29_s23), %s375_s0 }
  0x15   : > { %s340_s24 = scalar_lea.sflag [#allocation3], %s377_s23 }
  0x16   : > { %284 = dma.done.wait (%p196_p4), %s340_s24, 16 }
  0x17   : > { %286 = vsyncadd (%p196_p4), %s340_s24, 4294967280  ;;  %s43_s25 = sld [smem:[#allocation5 + %s293_s19]]  ;;  %s46_s26 = scalar_lea.vmem [#allocation2], %s293_s19 }
  0x18   : > { %s55_s27 = sshll.u32 %s46_s26, 4  ;;  %s229_s7 = scalar_lea.hbm %s372_s1, 256  ;;  %s56_s27 = int_to_ptr.vmem [resolvable:$true] %s55_s27 }
  0x1d   : > { %s182_s28 = sshll.u32 %s43_s25, 4 }
  0x1e   : > { %s45_s3 = scalar_lea.hbm %s372_s1, %s182_s28 }
  0x1f   : > { %s227_s4 = scalar_lea.hbm %s45_s3, 16  ;;  %p230_p7 = scmp.lt.u32.totalorder %s45_s3, %s372_s1 }
  0x20   : > { %p228_p6 = scmp.ne.s32.totalorder %s45_s3, %s227_s4  ;;  %p231_p8 = scmp.lt.u32.totalorder %s229_s7, %s227_s4 }
  0x21   : > { %p233_p10 = scmp.lt.u32.totalorder %s227_s4, %s45_s3 }
  0x22   : > { %p232_p9 = por %p231_p8, %p230_p7 }
  0x24   : > { %p234_p11 = por %p233_p10, %p232_p9 }
  0x26   : > { %p235_p12 = pnand %p234_p11, %p228_p6 }
  0x28   : > { %238 = shalt.err (!%p235_p12)  }
  0x29   : > { %s239_s10 = scalar_lea.vmem %s56_s27, 16  ;;  %s300_s11 = smov [#allocation2]  }
  0x2a   : > { %p240_p13 = scmp.ne.s32.totalorder %s56_s27, %s239_s10  ;;  %s241_s12 = sshll.u32 %s300_s11, 4  ;;  %s242_s12 = int_to_ptr.vmem [resolvable:$false] %s241_s12 }
  0x2b   : > { %s243_s13 = scalar_lea.vmem %s242_s12, 256  ;;  %p244_p0 = scmp.lt.s32.totalorder %s56_s27, %s242_s12 }
  0x2c   : > { %p245_p1 = scmp.lt.s32.totalorder %s243_s13, %s239_s10 }
  0x2e   : > { %p246_p2 = por %p245_p1, %p244_p0 }
  0x30   : > { %p247_p3 = pnand %p246_p2, %p240_p13 }
  0x32   : > { %250 = shalt.err (!%p247_p3)  }
  0x33   : > { %58 = dma.hbm_to_vmem [thread:$0]  %s45_s3, 16, %s56_s27, %s340_s24 }
  0x34   : > { %s18_s19 = sadd.s32 1, %s293_s19  }
  0x35   : > { %p15_p4 = scmp.ge.s32.totalorder %s18_s19, 16  }
  0x36   :  { %s295_s14 = smov (%p15_p4), 0  }
  0x37   :  { %17 = sbr.rel (!%p15_p4) target bundleno = 13 (0xd), region = 54 }
  0x3e LB: > { %s65_s15 = sadd.s32 8, %s297_s14  ;;  %s297_s14 = sphi %s295_s14, %s64_s14  }
  0x3f   : > { %p66_p5 = scmp.lt.s32.totalorder %s65_s15, 0  ;;  %s67_s16 = ssub.s32 0, %s65_s15 }
  0x40   : > { %s183_s17 = smin.u32 %s67_s16, %s65_s15 }
  0x41   : > { %s69_s18 = sand.u32 7, %s183_s17  }
  0x42   : > { %s70_s20 = ssub.s32 0, %s69_s18 }
  0x43   : > { %s379_s20 = smov (!%p66_p5, %s70_s20), %s69_s18 }
  0x44   : > { %p185_p6 = scmp.lt.s32.totalorder %s379_s20, 0  ;;  %s76_s21 = sadd.s32 8, %s379_s20 }
  0x46   : > { %s381_s21 = smov (!%p185_p6, %s76_s21), %s379_s20 }
  0x47   : > { %s80_s22 = scalar_lea.sflag [#allocation3], %s381_s21 }
  0x48   : > { %287 = dma.done.wait %s80_s22, 16 }
  0x49   : > { %288 = vsyncadd %s80_s22, 4294967280  ;;  %s64_s14 = sadd.s32 1, %s297_s14  }
  0x4a   : > { %p61_p7 = scmp.ge.s32.totalorder %s64_s14, 8  }
  0x4b   :  { %v84_v0 = vld [vmem:[#allocation2] sm:$0xff] (%p61_p7)  ;;  %vm88_vm0 = vcmask (%p61_p7), 261120   ;;  %v85_v1 = vld [vmem:[#allocation2 + $0x8] sm:$0xff] (%p61_p7)  ;;  %s301_s1 = smov (%p61_p7), [#allocation6]  }
  0x4c   :  { %63 = sbr.rel (!%p61_p7) target bundleno = 62 (0x3e), region = 65  ;;  %v86_v2 = vmul.f32 (%p61_p7), 5.656854, %v84_v0  ;;  %v87_v3 = vmul.f32 (%p61_p7), 5.656854, %v85_v1  ;;  %s96_s19 = sshll.u32 (%p61_p7), %s301_s1, 4  ;;  %s97_s19 = int_to_ptr.vmem [resolvable:$true] %s96_s19 }
  0x4d   :  { %s251_s0 = scalar_lea.vmem (%p61_p7), %s97_s19, 256  ;;  %p256_p9 = scmp.lt.s32.totalorder (%p61_p7), %s97_s19, %s97_s19 }
  0x4e   :  { %89 = vst.msk [vmem:[#allocation6] sm:$0xff] (%p61_p7), %vm88_vm0, %v86_v2  ;;  %90 = vst.msk [vmem:[#allocation6 + $0x8] sm:$0xff] (%p61_p7), %vm88_vm0, %v87_v3  ;;  %p252_p8 = scmp.ne.s32.totalorder (%p61_p7), %s97_s19, %s251_s0  ;;  %p257_p10 = scmp.lt.s32.totalorder (%p61_p7), %s251_s0, %s251_s0 }
  0x50   :  { %p258_p11 = por (%p61_p7), %p257_p10, %p256_p9 }
  0x52   :  { %p259_p12 = pnand (%p61_p7), %p258_p11, %p252_p8 }
  0x54   :  { %262 = shalt.err (!%p259_p12)
}
  0x55   :  { %s263_s25 = scalar_lea.hbm %s373_s2, 256 }
  0x56   :  { %p264_p13 = scmp.ne.s32.totalorder %s373_s2, %s263_s25  ;;  %p267_p0 = scmp.lt.u32.totalorder %s263_s25, %s373_s2 }
  0x58   :  { %p269_p1 = pnand %p267_p0, %p264_p13 }
  0x5a   :  { %272 = shalt.err (!%p269_p1)
}
  0x5b   :  { %s302_s30 = smov 128   ;;  %s303_s3 = smov 8  }
  0x5c   :  { %102 = dma.vmem_to_hbm [thread:$0]  %s97_s19, 256, %s373_s2, [#allocation7], %s302_s30, %s302_s30, %s303_s3  }
  0x5d   :  { %289 = dma.done.wait [#allocation7], 256  }
  0x5e   :  { %290 = vsyncadd [#allocation7], 4294967040 }
  0x5f   :  { %106 = vsyncpa [#allocation7], 1 }
  0x60   :  { %107 = vsyncmov [#allocation3] }
  0x63   :  { %s108_s6 = vpop.sfrf %107 }
  0x64   :  { %p186_p2 = scmp.ne.s32.totalorder %s108_s6, 0 }
  0x66   :  { %112 = shalt.err (%p186_p2)  }
  0x67   :  { %114 = vsyncmov [#allocation3 + $0x1] }
  0x6a   :  { %s115_s7 = vpop.sfrf %114 }
  0x6b   :  { %p187_p3 = scmp.ne.s32.totalorder %s115_s7, 0 }
  0x6d   :  { %119 = shalt.err (%p187_p3)  }
  0x6e   :  { %121 = vsyncmov [#allocation3 + $0x2] }
  0x71   :  { %s122_s8 = vpop.sfrf %121 }
  0x72   :  { %p188_p4 = scmp.ne.s32.totalorder %s122_s8, 0 }
  0x74   :  { %126 = shalt.err (%p188_p4)  }
  0x75   :  { %128 = vsyncmov [#allocation3 + $0x3] }
  0x78   :  { %s129_s9 = vpop.sfrf %128 }
  0x79   :  { %p189_p5 = scmp.ne.s32.totalorder %s129_s9, 0 }
  0x7b   :  { %133 = shalt.err (%p189_p5)  }
  0x7c   :  { %135 = vsyncmov [#allocation3 + $0x4] }
  0x7f   :  { %s136_s2 = vpop.sfrf %135 }
  0x80   :  { %p190_p6 = scmp.ne.s32.totalorder %s136_s2, 0 }
  0x82   :  { %140 = shalt.err (%p190_p6)  }
  0x83   :  { %142 = vsyncmov [#allocation3 + $0x5] }
  0x86   :  { %s143_s10 = vpop.sfrf %142 }
  0x87   :  { %p191_p7 = scmp.ne.s32.totalorder %s143_s10, 0 }
  0x89   :  { %147 = shalt.err (%p191_p7)  }
  0x8a   :  { %149 = vsyncmov [#allocation3 + $0x6] }
  0x8d   :  { %s150_s11 = vpop.sfrf %149 }
  0x8e   :  { %p192_p8 = scmp.ne.s32.totalorder %s150_s11, 0 }
  0x90   :  { %154 = shalt.err (%p192_p8)  }
  0x91   :  { %156 = vsyncmov [#allocation3 + $0x7] }
  0x94   :  { %s157_s12 = vpop.sfrf %156 }
  0x95   :  { %p193_p9 = scmp.ne.s32.totalorder %s157_s12, 0 }
  0x97   :  { %161 = shalt.err (%p193_p9)  }

</bundles_post_ra>
